<compile_context>
chip_gen: v7x
topology: tpu7x:2x2x1
jax: 0.10.0
libtpu: 0.0.40
codegen_flags: <defaults>
</compile_context>

<pallas_src>
import jax
import jax.numpy as jnp
from jax.experimental import pallas as pl
from jax.experimental.pallas import tpu as pltpu

# ----------------------------- small config ---------------------------------
B = 2            # batch
L = 8            # sequence length
W = 4            # audio window size
FACE3D_DIM = 16  # cfg.DATASET.FACE3D_DIM  (C_face)
D_MODEL = 32     # cfg.D_MODEL
L_CLIP = 8       # style clip length

# weight-slab plane indices
_WC1, _WX1, _W2, _W3, _TW1, _TW2, _WDEC, _WSTY = range(8)
# bias-slab row indices
_B1, _B2, _B3, _TB1, _TB2, _BDEC = range(6)


# --------------------- fused Pallas kernel (single call) ---------------------
def _noise_predictor_kernel(acts_ref, w_ref, b_ref, o_ref):
    f32 = jnp.float32

    def dot(a, wi):
        # bf16 x bf16 MXU matmul, f32 accumulation (astype is a no-op for the bf16 input planes)
        return jnp.dot(a.astype(jnp.bfloat16), w_ref[wi], preferred_element_type=f32)

    def bias(r):
        return b_ref[r:r + 1, :]          # (1, 128) f32, broadcast over rows

    content = acts_ref[0]   # (BL, W*D)  bf16, W window tokens packed per 128-lane row
    xt      = acts_ref[1]   # (BL, 128)  lanes[:C_face]  = x_t,            rest 0
    sinus   = acts_ref[2]   # (BL, 128)  lanes[:D_MODEL] = time sinusoid,  rest 0
    style   = acts_ref[3]   # (BL, 128)  lanes[:D_MODEL] = style code,     rest 0

    # ---- time_embed_net: Linear -> SiLU -> Linear (runs at B*L rows; output lane-tiled x W) ----
    th = dot(sinus, _TW1) + bias(_TB1)                            # (BL, 128), lanes >= D_MODEL stay 0
    th = th * pl.reciprocal(1.0 + jnp.exp(-th), approx=True)      # SiLU in f32; exp + rcp ride the EUP
    temb = dot(th, _TW2) + bias(_TB2)                             # (BL, W*D), lane-tiled over W

    # ---- content_xt_to_decoder_input_wo_time: Linear, ReLU, Linear, ReLU, Linear ----
    # Layer-1 weight is split content / x_t; x_t broadcasts over W via its lane-tiled,
    # zero-row-padded weight plane (matches torch.cat((content, x_t_expand), dim=3)).
    h = dot(content, _WC1) + dot(xt, _WX1) + bias(_B1)
    h = jnp.maximum(h, 0.0)
    h = dot(h, _W2) + bias(_B2)
    h = jnp.maximum(h, 0.0)
    h = dot(h, _W3) + bias(_B3)                                   # (BL, W*D)

    # ---- decoder_input = decoder_input_without_time + time_embed_expand ----
    dec_in = h + temb                                             # (BL, W*D), packed

    # ---- fused decoder stand-in: window-mean folded into _WDEC, + style_code @ dec_w + dec_b ----
    # TODO(synk): real decoder is a transformer chosen via get_network(cfg.DECODER_TYPE).
    e = dot(dec_in, _WDEC) + dot(style, _WSTY) + bias(_BDEC)      # (BL, 128), lanes[:C_face] valid
    o_ref[...] = e[:, :o_ref.shape[1]]


def fused_noise_predictor_core(acts, w_slab, b_slab, out_rows, out_cols):
    """time MLP + 3-layer ReLU MLP + time add + fused decoder stand-in; one non-gridded pallas_call."""
    vmem = lambda: pl.BlockSpec(memory_space=pltpu.MemorySpace.VMEM)
    return pl.pallas_call(
        _noise_predictor_kernel,
        out_shape=jax.ShapeDtypeStruct((out_rows, out_cols), jnp.float32),
        in_specs=[vmem(), vmem(), vmem()],
        out_specs=vmem(),
    )(acts, w_slab, b_slab)


# --------------------------- plain-JAX glue ----------------------------------
def sinusoidal_embedding(t, dim):
    # Matches dreamtalk's sinusoidal_embedding: concat([cos, sin], dim=1).
    half = dim // 2
    freqs = jnp.power(10000.0, -jnp.arange(half, dtype=jnp.float32) / half)
    sinusoid = t.astype(jnp.float32)[:, None] * freqs[None, :]
    x = jnp.concatenate([jnp.cos(sinusoid), jnp.sin(sinusoid)], axis=1)
    if dim % 2 != 0:
        x = jnp.concatenate([x, jnp.zeros_like(x[:, :1])], axis=1)
    return x


def content_encoder_standin(audio, p):
    # TODO(synk): real content encoder is a transformer chosen via get_network(cfg.CONTENT_ENCODER_TYPE);
    # stand-in: per-scalar linear embedding  (B, L, W) -> (B, L, W, D_MODEL)
    return audio[..., None] * p["ce_w"][None, None, None, :] + p["ce_b"][None, None, None, :]


def style_encoder_standin(style_clip, style_pad_mask, p):
    # TODO(synk): real style encoder is a transformer with attention pooling;
    # stand-in: masked mean over the clip axis followed by a linear map to D_MODEL.
    valid = 1.0 - style_pad_mask.astype(jnp.float32)          # True == padded
    valid = valid[..., None]                                   # (B, L_clip, 1)
    pooled = (style_clip * valid).sum(axis=1) / jnp.maximum(valid.sum(axis=1), 1.0)
    return pooled @ p["se_w"] + p["se_b"]                      # (B, D_MODEL)


def decoder_standin(decoder_input, style_code, p):
    # TODO(synk): real decoder is a transformer decoder chosen via get_network(cfg.DECODER_TYPE);
    # stand-in: mean over the window axis, add style code, linear to FACE3D_DIM.
    h = decoder_input.mean(axis=2) + style_code[:, None, :]    # (B, L, D_MODEL)
    return h @ p["dec_w"] + p["dec_b"]                         # (B, L, FACE3D_DIM)


def noise_predictor_forward(params, x_t, t, audio, style_clip, style_pad_mask,
                            ready_style_code=None):
    Bn, Ln, C_face = x_t.shape
    Wn = audio.shape[2]
    BL = Bn * Ln
    WD = Wn * D_MODEL

    content = content_encoder_standin(audio, params)            # (B, L, W, D)
    content_packed = content.reshape(BL, WD)                    # lane-dense: W tokens per 128-lane row
    xt2d = x_t.reshape(BL, C_face)

    if ready_style_code is not None:
        style_code = ready_style_code
    else:
        style_code = style_encoder_standin(style_clip, style_pad_mask, params)   # (B, D)

    time_sinusoidal = sinusoidal_embedding(t, D_MODEL)          # (B, D)

    # Broadcast per-batch rows to B*L rows here (free; fuses into the packing fusion) so the
    # kernel needs no replication matmul at its tail.
    sinus_bl = jnp.repeat(time_sinusoidal, Ln, axis=0)          # (B*L, D)
    style_bl = jnp.repeat(style_code, Ln, axis=0)               # (B*L, D)

    # One bf16 activation slab -> a single input DMA.
    acts = jnp.zeros((4, BL, WD), jnp.bfloat16)
    acts = acts.at[0].set(content_packed.astype(jnp.bfloat16))
    acts = acts.at[1, :, :C_face].set(xt2d.astype(jnp.bfloat16))
    acts = acts.at[2, :, :D_MODEL].set(sinus_bl.astype(jnp.bfloat16))
    acts = acts.at[3, :, :D_MODEL].set(style_bl.astype(jnp.bfloat16))

    e2d = fused_noise_predictor_core(acts, params["k_w"], params["k_b"], BL, C_face)
    return e2d.reshape(Bn, Ln, C_face)


# --------------------- pure-JAX reference (f32, exact SiLU) -------------------
def noise_predictor_forward_ref(p, x_t, t, audio, style_clip, style_pad_mask,
                                ready_style_code=None):
    Bn, Ln, C_face = x_t.shape
    Wn = audio.shape[2]
    content = content_encoder_standin(audio, p)                              # (B, L, W, D)
    x_t_expand = jnp.broadcast_to(x_t[:, :, None, :], (Bn, Ln, Wn, C_face))
    cat = jnp.concatenate([content, x_t_expand], axis=3)                     # (B, L, W, D + C_face)
    h = jnp.maximum(cat @ p["m_w1"] + p["m_b1"][0], 0.0)
    h = jnp.maximum(h @ p["m_w2"] + p["m_b2"][0], 0.0)
    h = h @ p["m_w3"] + p["m_b3"][0]
    ts = sinusoidal_embedding(t, D_MODEL)
    th = ts @ p["t_w1"] + p["t_b1"][0]
    th = th * jax.nn.sigmoid(th)                                             # SiLU
    temb = th @ p["t_w2"] + p["t_b2"][0]
    dec_in = h + temb[:, None, None, :]
    if ready_style_code is not None:
        style_code = ready_style_code
    else:
        style_code = style_encoder_standin(style_clip, style_pad_mask, p)
    return decoder_standin(dec_in, style_code, p)


# ----------------------------- params ----------------------------------------
def init_params(key):
    ks = jax.random.split(key, 16)
    s = 0.05
    nrm = lambda k, shp: (s * jax.random.normal(k, shp)).astype(jnp.float32)
    C_in = D_MODEL + FACE3D_DIM
    return {
        # content_xt_to_decoder_input_wo_time: Linear(D+C_face, D), ReLU, Linear(D, D), ReLU, Linear(D, D)
        "m_w1": nrm(ks[0], (C_in, D_MODEL)),    "m_b1": nrm(ks[1], (1, D_MODEL)),
        "m_w2": nrm(ks[2], (D_MODEL, D_MODEL)), "m_b2": nrm(ks[3], (1, D_MODEL)),
        "m_w3": nrm(ks[4], (D_MODEL, D_MODEL)), "m_b3": nrm(ks[5], (1, D_MODEL)),
        # time_embed_net: Linear(D, D), SiLU, Linear(D, D)
        "t_w1": nrm(ks[6], (D_MODEL, D_MODEL)), "t_b1": nrm(ks[7], (1, D_MODEL)),
        "t_w2": nrm(ks[8], (D_MODEL, D_MODEL)), "t_b2": nrm(ks[9], (1, D_MODEL)),
        # stand-in sub-networks
        "ce_w": nrm(ks[10], (D_MODEL,)), "ce_b": nrm(ks[11], (D_MODEL,)),
        "se_w": nrm(ks[12], (FACE3D_DIM, D_MODEL)), "se_b": nrm(ks[13], (D_MODEL,)),
        "dec_w": nrm(ks[14], (D_MODEL, FACE3D_DIM)), "dec_b": nrm(ks[15], (FACE3D_DIM,)),
    }


def pack_params(p):
    """One-time repack of all weights into two kernel slabs (outside the hot path).

    Weight slab (8, 128, 128) bf16, one plane per matmul, every contraction 128-wide:
      _WC1  kron(eye(W), m_w1[:D])            block-diagonal content half of layer 1
      _WX1  tile(m_w1[D:], (1, W)) row-padded x_t half, lane-tiled so x_t broadcasts over W
      _W2/_W3  kron(eye(W), m_w*)             block-diagonal layers 2/3
      _TW1  m_t_w1 padded                     time MLP layer 1
      _TW2  tile(t_w2, (1, W)) row-padded     time MLP layer 2 (output lane-tiled over W)
      _WDEC kron(ones(W,1)/W, dec_w) col-pad  decoder stand-in with the window-mean folded in
      _WSTY dec_w padded                      style-code path of the decoder stand-in
    Bias slab (8, 128) f32: b1/b2/b3/tb2 lane-tiled over W, tb1/dec_b zero-padded to 128 lanes.
    """
    D, Cf, Wn = D_MODEL, FACE3D_DIM, W
    WD = Wn * D
    eye_w = jnp.eye(Wn, dtype=jnp.float32)
    bd = lambda m: jnp.kron(eye_w, m)                       # (W*K, W*N) block-diagonal

    def padw(m):
        out = jnp.zeros((WD, WD), jnp.float32)
        return out.at[:m.shape[0], :m.shape[1]].set(m)

    def padb(v):
        out = jnp.zeros((WD,), jnp.float32)
        flat = v.reshape(-1)
        return out.at[:flat.shape[0]].set(flat)

    w1_content = p["m_w1"][:D, :]          # (D, D)
    w1_xt = p["m_w1"][D:, :]               # (Cf, D)

    w_slab = jnp.stack([
        bd(w1_content),                                        # _WC1
        padw(jnp.tile(w1_xt, (1, Wn))),                        # _WX1
        bd(p["m_w2"]),                                         # _W2
        bd(p["m_w3"]),                                         # _W3
        padw(p["t_w1"]),                                       # _TW1
        padw(jnp.tile(p["t_w2"], (1, Wn))),                    # _TW2
        padw(jnp.kron(jnp.ones((Wn, 1), jnp.float32) / Wn, p["dec_w"])),   # _WDEC (mean over W folded in)
        padw(p["dec_w"]),                                      # _WSTY
    ]).astype(jnp.bfloat16)                                    # (8, 128, 128)

    b_slab = jnp.stack([
        padb(jnp.tile(p["m_b1"], (1, Wn))),                    # _B1
        padb(jnp.tile(p["m_b2"], (1, Wn))),                    # _B2
        padb(jnp.tile(p["m_b3"], (1, Wn))),                    # _B3
        padb(p["t_b1"]),                                       # _TB1
        padb(jnp.tile(p["t_b2"], (1, Wn))),                    # _TB2
        padb(p["dec_b"]),                                      # _BDEC
        jnp.zeros((WD,), jnp.float32),
        jnp.zeros((WD,), jnp.float32),
    ])                                                         # (8, 128) f32

    kp = dict(p)
    kp["k_w"] = w_slab
    kp["k_b"] = b_slab
    return kp


if __name__ == "__main__":
    key = jax.random.PRNGKey(0)
    kp_, kx, ka, ks_, kt = jax.random.split(key, 5)

    raw_params = init_params(kp_)
    params = pack_params(raw_params)       # one-time weight repack (outside the hot path)

    x_t = jax.random.normal(kx, (B, L, FACE3D_DIM), dtype=jnp.float32)
    t = jax.random.uniform(kt, (B,), dtype=jnp.float32) * 1000.0
    audio = jax.random.normal(ka, (B, L, W), dtype=jnp.float32)
    style_clip = jax.random.normal(ks_, (B, L_CLIP, FACE3D_DIM), dtype=jnp.float32)
    # True == padded position (last two frames padded)
    style_pad_mask = jnp.concatenate(
        [jnp.zeros((B, L_CLIP - 2), dtype=bool), jnp.ones((B, 2), dtype=bool)], axis=1)

    fwd = jax.jit(noise_predictor_forward)
    e_theta = fwd(params, x_t, t, audio, style_clip, style_pad_mask)
    jax.block_until_ready(e_theta)

    # Pure-JAX f32 reference; loose tolerance expected (bf16 weights/activations + approx-rcp SiLU).
    e_ref = noise_predictor_forward_ref(raw_params, x_t, t, audio, style_clip, style_pad_mask)
    max_err = float(jnp.max(jnp.abs(e_theta - e_ref)))

    assert e_theta.shape == (B, L, FACE3D_DIM)
    assert e_theta.dtype == jnp.float32
    assert bool(jnp.all(jnp.isfinite(e_theta)))
    assert max_err < 5e-2, f"kernel vs reference max abs err {max_err}"
    print("KERNEL_OK")
</pallas_src>

<mosaic_0001>
module attributes {stable_mosaic.version = 11 : i64} {
  func.func @_noise_predictor_kernel(%arg0: memref<4x16x128xbf16, #tpu.memory_space<vmem>>, %arg1: memref<8x128x128xbf16, #tpu.memory_space<vmem>>, %arg2: memref<8x128xf32, #tpu.memory_space<vmem>>, %arg3: memref<16x16xf32, #tpu.memory_space<vmem>>) attributes {dimension_semantics = [], scalar_prefetch = 0 : i64, scratch_operands = 0 : i64, tpu.core_type = #tpu.core_type<tc>} {
    %c0 = arith.constant 0 : index
    %c0_0 = arith.constant 0 : index
    %c0_1 = arith.constant 0 : index
    %0 = vector.load %arg0[%c0, %c0_0, %c0_1] : memref<4x16x128xbf16, #tpu.memory_space<vmem>>, vector<1x16x128xbf16>
    %1 = vector.shape_cast %0 : vector<1x16x128xbf16> to vector<16x128xbf16>
    %c1 = arith.constant 1 : index
    %c0_2 = arith.constant 0 : index
    %c0_3 = arith.constant 0 : index
    %2 = vector.load %arg0[%c1, %c0_2, %c0_3] : memref<4x16x128xbf16, #tpu.memory_space<vmem>>, vector<1x16x128xbf16>
    %3 = vector.shape_cast %2 : vector<1x16x128xbf16> to vector<16x128xbf16>
    %c2 = arith.constant 2 : index
    %c0_4 = arith.constant 0 : index
    %c0_5 = arith.constant 0 : index
    %4 = vector.load %arg0[%c2, %c0_4, %c0_5] : memref<4x16x128xbf16, #tpu.memory_space<vmem>>, vector<1x16x128xbf16>
    %5 = vector.shape_cast %4 : vector<1x16x128xbf16> to vector<16x128xbf16>
    %c3 = arith.constant 3 : index
    %c0_6 = arith.constant 0 : index
    %c0_7 = arith.constant 0 : index
    %6 = vector.load %arg0[%c3, %c0_6, %c0_7] : memref<4x16x128xbf16, #tpu.memory_space<vmem>>, vector<1x16x128xbf16>
    %7 = vector.shape_cast %6 : vector<1x16x128xbf16> to vector<16x128xbf16>
    %c4 = arith.constant 4 : index
    %c0_8 = arith.constant 0 : index
    %c0_9 = arith.constant 0 : index
    %8 = vector.load %arg1[%c4, %c0_8, %c0_9] : memref<8x128x128xbf16, #tpu.memory_space<vmem>>, vector<1x128x128xbf16>
    %9 = vector.shape_cast %8 : vector<1x128x128xbf16> to vector<128x128xbf16>
    %cst = arith.constant dense<0.000000e+00> : vector<16x128xf32>
    %10 = tpu.matmul %5, %9, %cst {dimension_numbers = #tpu.dot_dimension_numbers<[1], [0], [0], [1], [0, 0, 1, 1], [], []>} : vector<16x128xbf16>, vector<128x128xbf16>, vector<16x128xf32> -> vector<16x128xf32>
    %c3_10 = arith.constant 3 : index
    %c0_11 = arith.constant 0 : index
    %11 = vector.load %arg2[%c3_10, %c0_11] : memref<8x128xf32, #tpu.memory_space<vmem>>, vector<1x128xf32>
    %12 = vector.broadcast %11 : vector<1x128xf32> to vector<16x128xf32>
    %13 = arith.addf %10, %12 : vector<16x128xf32>
    %cst_12 = arith.constant 0.000000e+00 : f32
    %14 = vector.broadcast %cst_12 : f32 to vector<16x128xf32>
    %15 = arith.subf %14, %13 : vector<16x128xf32>
    %16 = math.exp %15 : vector<16x128xf32>
    %cst_13 = arith.constant 1.000000e+00 : f32
    %17 = vector.broadcast %cst_13 : f32 to vector<16x128xf32>
    %18 = arith.addf %17, %16 : vector<16x128xf32>
    %19 = tpu.reciprocal %18 {approx = true} : vector<16x128xf32> -> vector<16x128xf32>
    %20 = arith.mulf %13, %19 : vector<16x128xf32>
    %21 = arith.truncf %20 : vector<16x128xf32> to vector<16x128xbf16>
    %c5 = arith.constant 5 : index
    %c0_14 = arith.constant 0 : index
    %c0_15 = arith.constant 0 : index
    %22 = vector.load %arg1[%c5, %c0_14, %c0_15] : memref<8x128x128xbf16, #tpu.memory_space<vmem>>, vector<1x128x128xbf16>
    %23 = vector.shape_cast %22 : vector<1x128x128xbf16> to vector<128x128xbf16>
    %cst_16 = arith.constant dense<0.000000e+00> : vector<16x128xf32>
    %24 = tpu.matmul %21, %23, %cst_16 {dimension_numbers = #tpu.dot_dimension_numbers<[1], [0], [0], [1], [0, 0, 1, 1], [], []>} : vector<16x128xbf16>, vector<128x128xbf16>, vector<16x128xf32> -> vector<16x128xf32>
    %c4_17 = arith.constant 4 : index
    %c0_18 = arith.constant 0 : index
    %25 = vector.load %arg2[%c4_17, %c0_18] : memref<8x128xf32, #tpu.memory_space<vmem>>, vector<1x128xf32>
    %26 = vector.broadcast %25 : vector<1x128xf32> to vector<16x128xf32>
    %27 = arith.addf %24, %26 : vector<16x128xf32>
    %c0_19 = arith.constant 0 : index
    %c0_20 = arith.constant 0 : index
    %c0_21 = arith.constant 0 : index
    %28 = vector.load %arg1[%c0_19, %c0_20, %c0_21] : memref<8x128x128xbf16, #tpu.memory_space<vmem>>, vector<1x128x128xbf16>
    %29 = vector.shape_cast %28 : vector<1x128x128xbf16> to vector<128x128xbf16>
    %cst_22 = arith.constant dense<0.000000e+00> : vector<16x128xf32>
    %30 = tpu.matmul %1, %29, %cst_22 {dimension_numbers = #tpu.dot_dimension_numbers<[1], [0], [0], [1], [0, 0, 1, 1], [], []>} : vector<16x128xbf16>, vector<128x128xbf16>, vector<16x128xf32> -> vector<16x128xf32>
    %c1_23 = arith.constant 1 : index
    %c0_24 = arith.constant 0 : index
    %c0_25 = arith.constant 0 : index
    %31 = vector.load %arg1[%c1_23, %c0_24, %c0_25] : memref<8x128x128xbf16, #tpu.memory_space<vmem>>, vector<1x128x128xbf16>
    %32 = vector.shape_cast %31 : vector<1x128x128xbf16> to vector<128x128xbf16>
    %cst_26 = arith.constant dense<0.000000e+00> : vector<16x128xf32>
    %33 = tpu.matmul %3, %32, %cst_26 {dimension_numbers = #tpu.dot_dimension_numbers<[1], [0], [0], [1], [0, 0, 1, 1], [], []>} : vector<16x128xbf16>, vector<128x128xbf16>, vector<16x128xf32> -> vector<16x128xf32>
    %34 = arith.addf %30, %33 : vector<16x128xf32>
    %c0_27 = arith.constant 0 : index
    %c0_28 = arith.constant 0 : index
    %35 = vector.load %arg2[%c0_27, %c0_28] : memref<8x128xf32, #tpu.memory_space<vmem>>, vector<1x128xf32>
    %36 = vector.broadcast %35 : vector<1x128xf32> to vector<16x128xf32>
    %37 = arith.addf %34, %36 : vector<16x128xf32>
    %cst_29 = arith.constant 0.000000e+00 : f32
    %38 = vector.broadcast %cst_29 : f32 to vector<16x128xf32>
    %39 = arith.maximumf %37, %38 : vector<16x128xf32>
    %40 = arith.truncf %39 : vector<16x128xf32> to vector<16x128xbf16>
    %c2_30 = arith.constant 2 : index
    %c0_31 = arith.constant 0 : index
    %c0_32 = arith.constant 0 : index
    %41 = vector.load %arg1[%c2_30, %c0_31, %c0_32] : memref<8x128x128xbf16, #tpu.memory_space<vmem>>, vector<1x128x128xbf16>
    %42 = vector.shape_cast %41 : vector<1x128x128xbf16> to vector<128x128xbf16>
    %cst_33 = arith.constant dense<0.000000e+00> : vector<16x128xf32>
    %43 = tpu.matmul %40, %42, %cst_33 {dimension_numbers = #tpu.dot_dimension_numbers<[1], [0], [0], [1], [0, 0, 1, 1], [], []>} : vector<16x128xbf16>, vector<128x128xbf16>, vector<16x128xf32> -> vector<16x128xf32>
    %c1_34 = arith.constant 1 : index
    %c0_35 = arith.constant 0 : index
    %44 = vector.load %arg2[%c1_34, %c0_35] : memref<8x128xf32, #tpu.memory_space<vmem>>, vector<1x128xf32>
    %45 = vector.broadcast %44 : vector<1x128xf32> to vector<16x128xf32>
    %46 = arith.addf %43, %45 : vector<16x128xf32>
    %cst_36 = arith.constant 0.000000e+00 : f32
    %47 = vector.broadcast %cst_36 : f32 to vector<16x128xf32>
    %48 = arith.maximumf %46, %47 : vector<16x128xf32>
    %49 = arith.truncf %48 : vector<16x128xf32> to vector<16x128xbf16>
    %c3_37 = arith.constant 3 : index
    %c0_38 = arith.constant 0 : index
    %c0_39 = arith.constant 0 : index
    %50 = vector.load %arg1[%c3_37, %c0_38, %c0_39] : memref<8x128x128xbf16, #tpu.memory_space<vmem>>, vector<1x128x128xbf16>
    %51 = vector.shape_cast %50 : vector<1x128x128xbf16> to vector<128x128xbf16>
    %cst_40 = arith.constant dense<0.000000e+00> : vector<16x128xf32>
    %52 = tpu.matmul %49, %51, %cst_40 {dimension_numbers = #tpu.dot_dimension_numbers<[1], [0], [0], [1], [0, 0, 1, 1], [], []>} : vector<16x128xbf16>, vector<128x128xbf16>, vector<16x128xf32> -> vector<16x128xf32>
    %c2_41 = arith.constant 2 : index
    %c0_42 = arith.constant 0 : index
    %53 = vector.load %arg2[%c2_41, %c0_42] : memref<8x128xf32, #tpu.memory_space<vmem>>, vector<1x128xf32>
    %54 = vector.broadcast %53 : vector<1x128xf32> to vector<16x128xf32>
    %55 = arith.addf %52, %54 : vector<16x128xf32>
    %56 = arith.addf %55, %27 : vector<16x128xf32>
    %57 = arith.truncf %56 : vector<16x128xf32> to vector<16x128xbf16>
    %c6 = arith.constant 6 : index
    %c0_43 = arith.constant 0 : index
    %c0_44 = arith.constant 0 : index
    %58 = vector.load %arg1[%c6, %c0_43, %c0_44] : memref<8x128x128xbf16, #tpu.memory_space<vmem>>, vector<1x128x128xbf16>
    %59 = vector.shape_cast %58 : vector<1x128x128xbf16> to vector<128x128xbf16>
    %cst_45 = arith.constant dense<0.000000e+00> : vector<16x128xf32>
    %60 = tpu.matmul %57, %59, %cst_45 {dimension_numbers = #tpu.dot_dimension_numbers<[1], [0], [0], [1], [0, 0, 1, 1], [], []>} : vector<16x128xbf16>, vector<128x128xbf16>, vector<16x128xf32> -> vector<16x128xf32>
    %c7 = arith.constant 7 : index
    %c0_46 = arith.constant 0 : index
    %c0_47 = arith.constant 0 : index
    %61 = vector.load %arg1[%c7, %c0_46, %c0_47] : memref<8x128x128xbf16, #tpu.memory_space<vmem>>, vector<1x128x128xbf16>
    %62 = vector.shape_cast %61 : vector<1x128x128xbf16> to vector<128x128xbf16>
    %cst_48 = arith.constant dense<0.000000e+00> : vector<16x128xf32>
    %63 = tpu.matmul %7, %62, %cst_48 {dimension_numbers = #tpu.dot_dimension_numbers<[1], [0], [0], [1], [0, 0, 1, 1], [], []>} : vector<16x128xbf16>, vector<128x128xbf16>, vector<16x128xf32> -> vector<16x128xf32>
    %64 = arith.addf %60, %63 : vector<16x128xf32>
    %c5_49 = arith.constant 5 : index
    %c0_50 = arith.constant 0 : index
    %65 = vector.load %arg2[%c5_49, %c0_50] : memref<8x128xf32, #tpu.memory_space<vmem>>, vector<1x128xf32>
    %66 = vector.broadcast %65 : vector<1x128xf32> to vector<16x128xf32>
    %67 = arith.addf %64, %66 : vector<16x128xf32>
    %68 = vector.extract_strided_slice %67 {offsets = [0, 0], sizes = [16, 16], strides = [1, 1]} : vector<16x128xf32> to vector<16x16xf32>
    %c0_51 = arith.constant 0 : index
    %c0_52 = arith.constant 0 : index
    %69 = vector.load %arg3[%c0_51, %c0_52] : memref<16x16xf32, #tpu.memory_space<vmem>>, vector<16x16xf32>
    tpu.vector_store %arg3[%c0_51, %c0_52], %68 {strides = array<i32>} : memref<16x16xf32, #tpu.memory_space<vmem>>, vector<16x16xf32>,
    return
  }
}

</mosaic_0001>

<bundles_post_ra>
// kernel: noise_predictor_forward.1
= control target key start
LH: loop header
LB: loop body
LE: loop exit
PB: predicated region body
PF: predicated region fallthrough
CT: control target
= control target key end

     0   :  { %v1510_v1 = vmov 0.0   ;;  %vm1511_vm0 = vmmov 0   ;;  %s1849_s0 = inlined_call_operand.vmem [shape: bf16[4,16,128], index: 0, kind: input, shape index: {}]   ;;  %s1850_s1 = inlined_call_operand.vmem [shape: bf16[8,128,128], index: 1, kind: input, shape index: {}]   ;;  %s1851_s2 = inlined_call_operand.vmem [shape: f32[8,128], index: 2, kind: input, shape index: {}]   ;;  %s1852_s3 = inlined_call_operand.hbm [shape: f32[16,16], index: 3, kind: output, shape index: {}]  }
   0x1   :  { %v1410_v0 = vld [vmem:[%s1850_s1 + $0x100] sm:$0xff]   ;;  %1237 = vmatprep.subr.bf16.mxu0 %v1510_v1  ;;  %1257 = vmatprep.subr.bf16.mxu1 %v1510_v1  ;;  %v1411_v2 = vld [vmem:[%s1850_s1 + $0x108] sm:$0xff]   ;;  %v1412_v3 = vld [vmem:[%s1850_s1 + $0x110] sm:$0xff]  }
   0x2   :  { %1238 = vmatpush3.bf16.msra.mxu0 %v1410_v0  ;;  %1253 = vmatprep.mubr.msk.bf16.mxu0 %vm1511_vm0, %v1510_v1  ;;  %v1413_v4 = vld [vmem:[%s1850_s1 + $0x118] sm:$0xff]   ;;  %v1414_v5 = vld [vmem:[%s1850_s1 + $0x120] sm:$0xff]   ;;  %v1415_v6 = vld [vmem:[%s1850_s1 + $0x128] sm:$0xff]  }
   0x3   :  { %1239 = vmatprep.subr.bf16.mxu0 %v1510_v1  ;;  %1273 = vmatprep.mubr.msk.bf16.mxu1 %vm1511_vm0, %v1510_v1  ;;  %v1416_v7 = vld [vmem:[%s1850_s1 + $0x130] sm:$0xff]   ;;  %v1417_v8 = vld [vmem:[%s1850_s1 + $0x138] sm:$0xff]  }
   0x4   :  { %v1418_v9 = vld [vmem:[%s1849_s0 + $0x10] sm:$0xff]  }
   0x6   :  { %1240 = vmatpush3.bf16.msra.mxu0 %v1411_v2 }
   0x7   :  { %1241 = vmatprep.subr.bf16.mxu0 %v1510_v1 }
   0xa   :  { %1242 = vmatpush3.bf16.msra.mxu0 %v1412_v3 }
   0xb   :  { %1243 = vmatprep.subr.bf16.mxu0 %v1510_v1 }
   0xe   :  { %1244 = vmatpush3.bf16.msra.mxu0 %v1413_v4 }
   0xf   :  { %1245 = vmatprep.subr.bf16.mxu0 %v1510_v1 }
  0x12   :  { %1246 = vmatpush3.bf16.msra.mxu0 %v1414_v5 }
  0x13   :  { %1247 = vmatprep.subr.bf16.mxu0 %v1510_v1 }
  0x16   :  { %1248 = vmatpush3.bf16.msra.mxu0 %v1415_v6 }
  0x17   :  { %1249 = vmatprep.subr.bf16.mxu0 %v1510_v1 }
  0x1a   :  { %1250 = vmatpush3.bf16.msra.mxu0 %v1416_v7 }
  0x1b   :  { %1251 = vmatprep.subr.bf16.mxu0 %v1510_v1 }
  0x1e   :  { %1252 = vmatpush3.bf16.msra.mxu0 %v1417_v8 }
  0x1f   :  { %1277 = vmatprep.subr.bf16.mxu0 %v1510_v1 }
  0x21   :  { %1254 = vmatmul.mubr.bf16.vlgmr.msra.gmra.mrb[0].mxu0 %v1418_v9 }
  0x22   :  { %1293 = vmatprep.mubr.msk.bf16.mxu0 %vm1511_vm0, %v1510_v1 }
  0x23   :  { %8 = vsyncpa [#allocation3], 0  ;;  %v1419_v10 = vld [vmem:[%s1850_s1 + $0x140] sm:$0xff]   ;;  %v1420_v11 = vld [vmem:[%s1850_s1 + $0x148] sm:$0xff]   ;;  %s1512_s23 = smov [#allocation2]   ;;  %vm954_vm1 = vcmask 130048  }
  0x24   :  { %1258 = vmatpush3.bf16.msra.mxu1 %v1419_v10  ;;  %v1421_v12 = vld [vmem:[%s1850_s1 + $0x150] sm:$0xff]   ;;  %v1422_v13 = vld [vmem:[%s1850_s1 + $0x158] sm:$0xff]   ;;  %v1423_v14 = vld [vmem:[%s1850_s1 + $0x160] sm:$0xff]   ;;  %s962_s24 = sshll.u32 %s1512_s23, 4  ;;  %s963_s24 = int_to_ptr.vmem [resolvable:$true] %s962_s24 }
  0x25   :  { %1259 = vmatprep.subr.bf16.mxu1 %v1510_v1  ;;  %v1424_v15 = vld [vmem:[%s1850_s1 + $0x168] sm:$0xff]   ;;  %v1425_v16 = vld [vmem:[%s1850_s1 + $0x170] sm:$0xff]   ;;  %v1426_v17 = vld [vmem:[%s1850_s1 + $0x178] sm:$0xff]   ;;  %s1486_s25 = scalar_lea.vmem %s963_s24, 256  ;;  %p1491_p1 = scmp.lt.s32.totalorder %s963_s24, %s963_s24 }
  0x26   :  { %v1427_v18 = vld [vmem:[%s1850_s1 + $0x40] sm:$0xff]   ;;  %v1429_v19 = vld [vmem:[%s1850_s1 + $0x48] sm:$0xff]   ;;  %v1431_v20 = vld [vmem:[%s1850_s1 + $0x50] sm:$0xff]   ;;  %p1487_p0 = scmp.ne.s32.totalorder %s963_s24, %s1486_s25  ;;  %p1492_p2 = scmp.lt.s32.totalorder %s1486_s25, %s1486_s25 }
  0x27   :  { %1278 = vmatpush3.bf16.msra.mxu0 %v1427_v18  ;;  %v1433_v21 = vld [vmem:[%s1850_s1 + $0x58] sm:$0xff]   ;;  %v1435_v22 = vld [vmem:[%s1850_s1 + $0x60] sm:$0xff]   ;;  %v1437_v23 = vld [vmem:[%s1850_s1 + $0x68] sm:$0xff]  }
  0x28   :  { %1260 = vmatpush3.bf16.msra.mxu1 %v1420_v11  ;;  %1279 = vmatprep.subr.bf16.mxu0 %v1510_v1  ;;  %v1439_v24 = vld [vmem:[%s1850_s1 + $0x70] sm:$0xff]   ;;  %v1441_v25 = vld [vmem:[%s1850_s1 + $0x78] sm:$0xff]   ;;  %v1442_v26 = vld [vmem:[%s1849_s0 + $0x8] sm:$0xff]   ;;  %p1493_p3 = por %p1492_p2, %p1491_p1 }
  0x29   :  { %1261 = vmatprep.subr.bf16.mxu1 %v1510_v1  ;;  %v1445_v27 = vld [vmem:[%s1850_s1 + $0x80] sm:$0xff]   ;;  %v1446_v28 = vld [vmem:[%s1850_s1 + $0x88] sm:$0xff]   ;;  %v1447_v29 = vld [vmem:[%s1850_s1 + $0x90] sm:$0xff]  }
  0x2a   :  { %v1448_v30 = vld [vmem:[%s1850_s1 + $0x98] sm:$0xff]   ;;  %v1449_v31 = vld [vmem:[%s1850_s1 + $0xa0] sm:$0xff]   ;;  %v1430_v53 = vld [vmem:[%s1850_s1 + $0x8] sm:$0xff]   ;;  %p1494_p4 = pnand %p1493_p3, %p1487_p0 }
  0x2b   :  { %1280 = vmatpush3.bf16.msra.mxu0 %v1429_v19  ;;  %v995_v32 = vld [vmem:[%s1851_s2 + $0x3] ss:$0 sm:$0xff]  ;;  %v1432_v54 = vld [vmem:[%s1850_s1 + $0x10] sm:$0xff]   ;;  %v1434_v55 = vld [vmem:[%s1850_s1 + $0x18] sm:$0xff]  }
  0x2c   :  { %1262 = vmatpush3.bf16.msra.mxu1 %v1421_v12  ;;  %1281 = vmatprep.subr.bf16.mxu0 %v1510_v1  ;;  %v1428_v51 = vld [vmem:[%s1850_s1] sm:$0xff]   ;;  %v1438_v57 = vld [vmem:[%s1850_s1 + $0x28] sm:$0xff]   ;;  %v1440_v58 = vld [vmem:[%s1850_s1 + $0x30] sm:$0xff]  }
  0x2d   :  { %1263 = vmatprep.subr.bf16.mxu1 %v1510_v1  ;;  %v1436_v56 = vld [vmem:[%s1850_s1 + $0x20] sm:$0xff]   ;;  %v1443_v59 = vld [vmem:[%s1850_s1 + $0x38] sm:$0xff]   ;;  %v1450_v63 = vld [vmem:[%s1850_s1 + $0xa8] sm:$0xff]  }
  0x2e   :  { %v1444_v60 = vld [vmem:[%s1849_s0] sm:$0xff]   ;;  %v1451_v3 = vld [vmem:[%s1850_s1 + $0xb0] sm:$0xff]   ;;  %v1452_v4 = vld [vmem:[%s1850_s1 + $0xb8] sm:$0xff]  }
  0x2f   :  { %1282 = vmatpush3.bf16.msra.mxu0 %v1431_v20  ;;  %v1453_v5 = vld [vmem:[%s1850_s1 + $0xc0] sm:$0xff]   ;;  %v1454_v6 = vld [vmem:[%s1850_s1 + $0xc8] sm:$0xff]   ;;  %v1455_v7 = vld [vmem:[%s1850_s1 + $0xd0] sm:$0xff]  }
  0x30   :  { %1264 = vmatpush3.bf16.msra.mxu1 %v1422_v13  ;;  %1283 = vmatprep.subr.bf16.mxu0 %v1510_v1  ;;  %v1456_v8 = vld [vmem:[%s1850_s1 + $0xd8] sm:$0xff]   ;;  %v1457_v9 = vld [vmem:[%s1850_s1 + $0xe0] sm:$0xff]   ;;  %v1458_v10 = vld [vmem:[%s1850_s1 + $0xe8] sm:$0xff]  }
  0x31   :  { %1265 = vmatprep.subr.bf16.mxu1 %v1510_v1  ;;  %v1064_v12 = vld [vmem:[%s1851_s2] ss:$0 sm:$0xff] }
  0x33   :  { %1284 = vmatpush3.bf16.msra.mxu0 %v1433_v21 }
  0x34   :  { %1266 = vmatpush3.bf16.msra.mxu1 %v1423_v14  ;;  %1285 = vmatprep.subr.bf16.mxu0 %v1510_v1 }
  0x35   :  { %1267 = vmatprep.subr.bf16.mxu1 %v1510_v1 }
  0x37   :  { %1286 = vmatpush3.bf16.msra.mxu0 %v1435_v22 }
  0x38   :  { %1268 = vmatpush3.bf16.msra.mxu1 %v1424_v15  ;;  %1287 = vmatprep.subr.bf16.mxu0 %v1510_v1 }
  0x39   :  { %1269 = vmatprep.subr.bf16.mxu1 %v1510_v1 }
  0x3b   :  { %1288 = vmatpush3.bf16.msra.mxu0 %v1437_v23  ;;  %v1459_v23 = vld [vmem:[%s1850_s1 + $0xf0] sm:$0xff]  }
  0x3c   :  { %1270 = vmatpush3.bf16.msra.mxu1 %v1425_v16  ;;  %1289 = vmatprep.subr.bf16.mxu0 %v1510_v1 }
  0x3d   :  { %1271 = vmatprep.subr.bf16.mxu1 %v1510_v1 }
  0x3f   :  { %1290 = vmatpush3.bf16.msra.mxu0 %v1439_v24  ;;  %v1460_v24 = vld [vmem:[%s1850_s1 + $0xf8] sm:$0xff]  }
  0x40   :  { %1272 = vmatpush3.bf16.msra.mxu1 %v1426_v17  ;;  %1291 = vmatprep.subr.bf16.mxu0 %v1510_v1 }
  0x41   :  { %1297 = vmatprep.subr.bf16.mxu1 %v1510_v1 }
  0x43   :  { %1292 = vmatpush3.bf16.msra.mxu0 %v1441_v25  ;;  %v1461_v25 = vld [vmem:[%s1850_s1 + $0x1c0] sm:$0xff]  }
  0x44   :  { %1317 = vmatprep.subr.bf16.mxu0 %v1510_v1 }
  0x46   :  { %1294 = vmatmul.mubr.bf16.vlgmr.msra.gmra.mrb[4].mxu0 %v1442_v26  ;;  %v1463_v26 = vld [vmem:[%s1850_s1 + $0x1c8] sm:$0xff]  }
  0x47   :  { %1333 = vmatprep.mubr.msk.bf16.mxu0 %vm1511_vm0, %v1510_v1  ;;  %1318 = vmatpush3.bf16.msra.mxu0 %v1445_v27  ;;  %v1465_v27 = vld [vmem:[%s1850_s1 + $0x1d0] sm:$0xff]  }
  0x48   :  { %1319 = vmatprep.subr.bf16.mxu0 %v1510_v1 }
  0x4b   :  { %1320 = vmatpush3.bf16.msra.mxu0 %v1446_v28  ;;  %v1467_v28 = vld [vmem:[%s1850_s1 + $0x1d8] sm:$0xff]  }
  0x4c   :  { %1321 = vmatprep.subr.bf16.mxu0 %v1510_v1 }
  0x4f   :  { %1322 = vmatpush3.bf16.msra.mxu0 %v1447_v29  ;;  %v1469_v29 = vld [vmem:[%s1850_s1 + $0x1e0] sm:$0xff]  }
  0x50   :  { %1323 = vmatprep.subr.bf16.mxu0 %v1510_v1 }
  0x53   :  { %1324 = vmatpush3.bf16.msra.mxu0 %v1448_v30  ;;  %v1471_v30 = vld [vmem:[%s1850_s1 + $0x1e8] sm:$0xff]  }
  0x54   :  { %1325 = vmatprep.subr.bf16.mxu0 %v1510_v1 }
  0x57   :  { %1326 = vmatpush3.bf16.msra.mxu0 %v1449_v31  ;;  %v1473_v31 = vld [vmem:[%s1850_s1 + $0x1f0] sm:$0xff]  }
  0x58   :  { %1327 = vmatprep.subr.bf16.mxu0 %v1510_v1 }
  0x5b   :  { %1328 = vmatpush3.bf16.msra.mxu0 %v1450_v63 }
  0x5c   :  { %1329 = vmatprep.subr.bf16.mxu0 %v1510_v1 }
  0x5f   :  { %1330 = vmatpush3.bf16.msra.mxu0 %v1451_v3  ;;  %v1164_v3 = vld [vmem:[%s1851_s2 + $0x5] ss:$0 sm:$0xff] }
  0x60   :  { %1331 = vmatprep.subr.bf16.mxu0 %v1510_v1 }
  0x63   :  { %1332 = vmatpush3.bf16.msra.mxu0 %v1452_v4 }
  0x64   :  { %1357 = vmatprep.subr.bf16.mxu0 %v1510_v1 }
  0xf4   :  { %v137_v33 = vpop.f32.mrb[0].mxu0 }
  0xf5   :  { %v138_v34 = vadd.f32 %v995_v32, %v137_v33  ;;  %v1255_v35 = vpop.f32.mrb[1].mxu0 }
  0xf6   :  { %v140_v36 = vpop.f32.mrb[2].mxu0 }
  0xf7   :  { %v144_v37 = vsub.f32 0.0, %v138_v34  ;;  %v141_v38 = vadd.f32 %v995_v32, %v140_v36  ;;  %v1256_v39 = vpop.f32.mrb[3].mxu0  ;;  %v1081_v32 = vld [vmem:[%s1851_s2 + $0x1] ss:$0 sm:$0xff] }
  0xf9   :  { %v146_v40 = vmul.f32 1.442695, %v144_v37  ;;  %v145_v41 = vsub.f32 0.0, %v141_v38 }
  0xfb   :  { %1478 = vpow2.f32 %v146_v40  ;;  %v148_v42 = vmul.f32 1.442695, %v145_v41  ;;  %v1462_v41 = vld [vmem:[%s1850_s1 + $0x180] sm:$0xff]  }
  0xfd   :  { %1480 = vpow2.f32 %v148_v42 }
 0x105   :  { %v1479_v43 = vpop.eup %1478 }
 0x106   :  { %v150_v44 = vadd.f32 1.0, %v1479_v43  ;;  %v1464_v43 = vld [vmem:[%s1850_s1 + $0x188] sm:$0xff]  }
 0x107   :  { %v1481_v45 = vpop.eup %1480 }
 0x108   :  { %1482 = vrcp.f32 %v150_v44  ;;  %v151_v46 = vadd.f32 1.0, %v1481_v45  ;;  %v1466_v44 = vld [vmem:[%s1850_s1 + $0x190] sm:$0xff]   ;;  %v1468_v45 = vld [vmem:[%s1850_s1 + $0x198] sm:$0xff]  }
 0x10a   :  { %1484 = vrcp.f32 %v151_v46  ;;  %v1470_v46 = vld [vmem:[%s1850_s1 + $0x1a0] sm:$0xff]  }
 0x112   :  { %v1483_v47 = vpop.eup %1482 }
 0x113   :  { %v154_v49 = vmul.f32 %v1483_v47, %v138_v34  ;;  %v1472_v47 = vld [vmem:[%s1850_s1 + $0x1a8] sm:$0xff]  }
 0x114   :  { %v1485_v48 = vpop.eup %1484 }
 0x115   :  { %v155_v50 = vmul.f32 %v1485_v48, %v141_v38  ;;  %v1474_v48 = vld [vmem:[%s1850_s1 + $0x1b0] sm:$0xff]  }
 0x117   :  { %v156_v52 = vpack.c.bf16 %v155_v50, %v154_v49  ;;  %v1475_v49 = vld [vmem:[%s1850_s1 + $0x1f8] sm:$0xff]  }
 0x118   :  { %v1476_v50 = vld [vmem:[%s1849_s0 + $0x18] sm:$0xff]  }
 0x119   :  { %1274 = vmatmul.mubr.bf16.vlgmr.msra.gmra.mrb[0].mxu1 %v156_v52  ;;  %v389_v61 = vpop.f32.mrb[4].mxu0  ;;  %v1021_v52 = vld [vmem:[%s1851_s2 + $0x4] ss:$0 sm:$0xff] }
 0x11a   :  { %1298 = vmatpush3.bf16.msra.mxu1 %v1428_v51  ;;  %1313 = vmatprep.mubr.msk.bf16.mxu1 %vm1511_vm0, %v1510_v1  ;;  %v1295_v62 = vpop.f32.mrb[5].mxu0  ;;  %v1477_v51 = vld [vmem:[%s1850_s1 + $0x1b8] sm:$0xff]  }
 0x11b   :  { %1299 = vmatprep.subr.bf16.mxu1 %v1510_v1  ;;  %v392_v0 = vpop.f32.mrb[6].mxu0 }
 0x11c   :  { %v1296_v2 = vpop.f32.mrb[7].mxu0 }
 0x11e   :  { %1300 = vmatpush3.bf16.msra.mxu1 %v1430_v53  ;;  %v1106_v53 = vld [vmem:[%s1851_s2 + $0x2] ss:$0 sm:$0xff] }
 0x11f   :  { %1301 = vmatprep.subr.bf16.mxu1 %v1510_v1 }
 0x122   :  { %1302 = vmatpush3.bf16.msra.mxu1 %v1432_v54  ;;  %v1397_v54 = vadd.f32 %v1106_v53, %v1021_v52 }
 0x123   :  { %1303 = vmatprep.subr.bf16.mxu1 %v1510_v1 }
 0x126   :  { %1304 = vmatpush3.bf16.msra.mxu1 %v1434_v55 }
 0x127   :  { %1305 = vmatprep.subr.bf16.mxu1 %v1510_v1 }
 0x12a   :  { %1306 = vmatpush3.bf16.msra.mxu1 %v1436_v56 }
 0x12b   :  { %1307 = vmatprep.subr.bf16.mxu1 %v1510_v1 }
 0x12e   :  { %1308 = vmatpush3.bf16.msra.mxu1 %v1438_v57 }
 0x12f   :  { %1309 = vmatprep.subr.bf16.mxu1 %v1510_v1 }
 0x132   :  { %1310 = vmatpush3.bf16.msra.mxu1 %v1440_v58 }
 0x133   :  { %1311 = vmatprep.subr.bf16.mxu1 %v1510_v1 }
 0x136   :  { %1312 = vmatpush3.bf16.msra.mxu1 %v1443_v59 }
 0x137   :  { %1337 = vmatprep.subr.bf16.mxu1 %v1510_v1 }
 0x139   :  { %1314 = vmatmul.mubr.bf16.vlgmr.msra.gmra.mrb[4].mxu1 %v1444_v60 }
 0x13a   :  { %1353 = vmatprep.mubr.msk.bf16.mxu1 %vm1511_vm0, %v1510_v1  ;;  %1338 = vmatpush3.bf16.msra.mxu1 %v1453_v5 }
 0x13b   :  { %1339 = vmatprep.subr.bf16.mxu1 %v1510_v1 }
 0x13e   :  { %1340 = vmatpush3.bf16.msra.mxu1 %v1454_v6 }
 0x13f   :  { %1341 = vmatprep.subr.bf16.mxu1 %v1510_v1 }
 0x142   :  { %1342 = vmatpush3.bf16.msra.mxu1 %v1455_v7 }
 0x143   :  { %1343 = vmatprep.subr.bf16.mxu1 %v1510_v1 }
 0x146   :  { %1344 = vmatpush3.bf16.msra.mxu1 %v1456_v8 }
 0x147   :  { %1345 = vmatprep.subr.bf16.mxu1 %v1510_v1 }
 0x14a   :  { %1346 = vmatpush3.bf16.msra.mxu1 %v1457_v9 }
 0x14b   :  { %1347 = vmatprep.subr.bf16.mxu1 %v1510_v1 }
 0x14e   :  { %1348 = vmatpush3.bf16.msra.mxu1 %v1458_v10 }
 0x14f   :  { %1349 = vmatprep.subr.bf16.mxu1 %v1510_v1 }
 0x152   :  { %1350 = vmatpush3.bf16.msra.mxu1 %v1459_v23 }
 0x153   :  { %1351 = vmatprep.subr.bf16.mxu1 %v1510_v1 }
 0x156   :  { %1352 = vmatpush3.bf16.msra.mxu1 %v1460_v24 }
 0x157   :  { %1377 = vmatprep.subr.bf16.mxu1 %v1510_v1 }
 0x20c   :  { %v484_v11 = vpop.f32.mrb[4].mxu1 }
 0x20d   :  { %v485_v13 = vadd.f32 %v484_v11, %v389_v61  ;;  %v1315_v14 = vpop.f32.mrb[5].mxu1 }
 0x20e   :  { %v487_v15 = vpop.f32.mrb[6].mxu1 }
 0x20f   :  { %v496_v16 = vadd.f32 %v1064_v12, %v485_v13  ;;  %v488_v17 = vadd.f32 %v487_v15, %v392_v0  ;;  %v1316_v18 = vpop.f32.mrb[7].mxu1 }
 0x211   :  { %v497_v19 = vadd.f32 %v1064_v12, %v488_v17  ;;  %v498_v20 = vmax.f32 %v496_v16, 0.0 }
 0x213   :  { %v499_v21 = vmax.f32 %v497_v19, 0.0 }
 0x215   :  { %v500_v22 = vpack.c.bf16 %v499_v21, %v498_v20 }
 0x217   :  { %1334 = vmatmul.mubr.bf16.vlgmr.msra.gmra.mrb[8].mxu0 %v500_v22 }
 0x218   :  { %1373 = vmatprep.mubr.msk.bf16.mxu0 %vm1511_vm0, %v1510_v1  ;;  %1358 = vmatpush3.bf16.msra.mxu0 %v1461_v25 }
 0x219   :  { %1359 = vmatprep.subr.bf16.mxu0 %v1510_v1 }
 0x21c   :  { %1360 = vmatpush3.bf16.msra.mxu0 %v1463_v26 }
 0x21d   :  { %1361 = vmatprep.subr.bf16.mxu0 %v1510_v1 }
 0x220   :  { %1362 = vmatpush3.bf16.msra.mxu0 %v1465_v27 }
 0x221   :  { %1363 = vmatprep.subr.bf16.mxu0 %v1510_v1 }
 0x224   :  { %1364 = vmatpush3.bf16.msra.mxu0 %v1467_v28 }
 0x225   :  { %1365 = vmatprep.subr.bf16.mxu0 %v1510_v1 }
 0x228   :  { %1366 = vmatpush3.bf16.msra.mxu0 %v1469_v29 }
 0x229   :  { %1367 = vmatprep.subr.bf16.mxu0 %v1510_v1 }
 0x22c   :  { %1368 = vmatpush3.bf16.msra.mxu0 %v1471_v30 }
 0x22d   :  { %1369 = vmatprep.subr.bf16.mxu0 %v1510_v1 }
 0x230   :  { %1370 = vmatpush3.bf16.msra.mxu0 %v1473_v31 }
 0x231   :  { %1371 = vmatprep.subr.bf16.mxu0 %v1510_v1 }
 0x234   :  { %1372 = vmatpush3.bf16.msra.mxu0 %v1475_v49 }
 0x237   :  { %1374 = vmatmul.mubr.bf16.vlgmr.msra.gmra.mrb[12].mxu0 %v1476_v50 }
 0x2ea   :  { %v605_v33 = vpop.f32.mrb[8].mxu0 }
 0x2eb   :  { %v606_v34 = vadd.f32 %v1081_v32, %v605_v33  ;;  %v1335_v35 = vpop.f32.mrb[9].mxu0 }
 0x2ec   :  { %v608_v36 = vpop.f32.mrb[10].mxu0 }
 0x2ed   :  { %v609_v37 = vadd.f32 %v1081_v32, %v608_v36  ;;  %v1336_v38 = vpop.f32.mrb[11].mxu0  ;;  %v612_v39 = vmax.f32 %v606_v34, 0.0 }
 0x2ef   :  { %v613_v40 = vmax.f32 %v609_v37, 0.0 }
 0x2f1   :  { %v614_v42 = vpack.c.bf16 %v613_v40, %v612_v39 }
 0x2f3   :  { %1354 = vmatmul.mubr.bf16.vlgmr.msra.gmra.mrb[0].mxu1 %v614_v42 }
 0x2f4   :  { %1378 = vmatpush3.bf16.msra.mxu1 %v1462_v41  ;;  %1393 = vmatprep.mubr.msk.bf16.mxu1 %vm1511_vm0, %v1510_v1 }
 0x2f5   :  { %1379 = vmatprep.subr.bf16.mxu1 %v1510_v1 }
 0x2f8   :  { %1380 = vmatpush3.bf16.msra.mxu1 %v1464_v43 }
 0x2f9   :  { %1381 = vmatprep.subr.bf16.mxu1 %v1510_v1 }
 0x2fc   :  { %1382 = vmatpush3.bf16.msra.mxu1 %v1466_v44 }
 0x2fd   :  { %1383 = vmatprep.subr.bf16.mxu1 %v1510_v1 }
 0x300   :  { %1384 = vmatpush3.bf16.msra.mxu1 %v1468_v45 }
 0x301   :  { %1385 = vmatprep.subr.bf16.mxu1 %v1510_v1 }
 0x304   :  { %1386 = vmatpush3.bf16.msra.mxu1 %v1470_v46 }
 0x305   :  { %1387 = vmatprep.subr.bf16.mxu1 %v1510_v1 }
 0x308   :  { %1388 = vmatpush3.bf16.msra.mxu1 %v1472_v47 }
 0x309   :  { %1389 = vmatprep.subr.bf16.mxu1 %v1510_v1 }
 0x30a   :  { %v851_v61 = vpop.f32.mrb[12].mxu0 }
 0x30b   :  { %v1375_v62 = vpop.f32.mrb[13].mxu0 }
 0x30c   :  { %1390 = vmatpush3.bf16.msra.mxu1 %v1474_v48  ;;  %v854_v63 = vpop.f32.mrb[14].mxu0 }
 0x30d   :  { %1391 = vmatprep.subr.bf16.mxu1 %v1510_v1  ;;  %v1376_v0 = vpop.f32.mrb[15].mxu0 }
 0x310   :  { %1392 = vmatpush3.bf16.msra.mxu1 %v1477_v51 }
 0x3c6   :  { %v719_v1 = vpop.f32.mrb[0].mxu1 }
 0x3c7   :  { %v1355_v55 = vpop.f32.mrb[1].mxu1  ;;  %v1398_v57 = vadd.f32 %v1397_v54, %v719_v1 }
 0x3c8   :  { %v722_v56 = vpop.f32.mrb[2].mxu1 }
 0x3c9   :  { %v1400_v58 = vadd.f32 %v1397_v54, %v722_v56  ;;  %v1356_v59 = vpop.f32.mrb[3].mxu1 }
 0x3cb   :  { %v728_v60 = vpack.c.bf16 %v1400_v58, %v1398_v57 }
 0x3cd   :  { %1394 = vmatmul.mubr.bf16.vlgmr.msra.gmra.mrb[8].mxu1 %v728_v60 }
 0x4a0   :  { %v940_v2 = vpop.f32.mrb[8].mxu1 }
 0x4a1   :  { %v941_v4 = vadd.f32 %v940_v2, %v851_v61  ;;  %v1395_v5 = vpop.f32.mrb[9].mxu1 }
 0x4a2   :  { %v943_v6 = vpop.f32.mrb[10].mxu1 }
 0x4a3   :  { %v952_v7 = vadd.f32 %v1164_v3, %v941_v4  ;;  %v944_v8 = vadd.f32 %v943_v6, %v854_v63  ;;  %v1396_v9 = vpop.f32.mrb[11].mxu1 }
 0x4a5   :  { %955 = vst.msk [vmem:[#allocation2] sm:$0xff] %vm954_vm1, %v952_v7  ;;  %v953_v10 = vadd.f32 %v1164_v3, %v944_v8 }
 0x4a7   :  { %956 = vst.msk [vmem:[#allocation2 + $0x8] sm:$0xff] %vm954_vm1, %v953_v10 }
 0x4a8   :  { %1497 = shalt.err (!%p1494_p4)
}
 0x4a9   :  { %s1498_s27 = scalar_lea.hbm %s1852_s3, 256 }
 0x4aa   :  { %p1499_p5 = scmp.ne.s32.totalorder %s1852_s3, %s1498_s27  ;;  %p1502_p6 = scmp.lt.u32.totalorder %s1498_s27, %s1852_s3 }
 0x4ac   :  { %p1504_p7 = pnand %p1502_p6, %p1499_p5 }
 0x4ae   :  { %1507 = shalt.err (!%p1504_p7)
}
 0x4af   :  { %s1513_s5 = smov 128   ;;  %s1514_s6 = smov 8  }
 0x4b0   :  { %968 = dma.vmem_to_hbm [thread:$0]  %s963_s24, 256, %s1852_s3, [#allocation3], %s1513_s5, %s1513_s5, %s1514_s6  }
 0x4b1   :  { %1508 = dma.done.wait [#allocation3], 256  }
 0x4b2   :  { %1509 = vsyncadd [#allocation3], 4294967040 }
 0x4b3   :  { %972 = vsyncpa [#allocation3], 1 }

</bundles_post_ra>
